<compile_context>
chip_gen: v7x
topology: tpu7x:2x2x1
jax: 0.10.0
libtpu: 0.0.40
codegen_flags: <defaults>
</compile_context>

<pallas_src>
import jax
import jax.numpy as jnp
from jax.experimental import pallas as pl
from jax.experimental.pallas import tpu as pltpu


# ----------------------------- Pallas kernel ------------------------------ #
def _ce_argmax_kernel(logits_ref, targets_ref, loss_ref, pred_ref):
    """Fused per-sample cross-entropy + argmax for one batch tile.

    logits_ref : (TB, C) float32   logits tile (classes on lanes)
    targets_ref: (TB, 1) int32     class index per row
    loss_ref   : (TB, 1) float32   per-sample CE (no reduction, no weight)
    pred_ref   : (TB, 1) int32     argmax class per row
    """
    logits = logits_ref[...].astype(jnp.float32)            # (TB, C)
    tgt = targets_ref[...]                                   # (TB, 1) int32

    n_cls = logits.shape[-1]
    cls_ids = jax.lax.broadcasted_iota(jnp.int32, logits.shape, dimension=1)

    # Numerically stable log-sum-exp over the class (lane) axis.
    row_max = jnp.max(logits, axis=-1, keepdims=True)        # (TB, 1)
    lse = row_max + jnp.log(
        jnp.sum(jnp.exp(logits - row_max), axis=-1, keepdims=True))

    # logits[i, tgt[i]] via a one-hot mask + lane reduction (fully vectorized,
    # no scalar gather / per-row DMA).
    picked = jnp.sum(
        jnp.where(cls_ids == tgt, logits, jnp.zeros_like(logits)),
        axis=-1, keepdims=True)

    loss_ref[...] = lse - picked                              # per-sample CE

    # Argmax over classes: smallest index attaining the row max
    # (matches first-occurrence argmax semantics).
    is_max = logits == row_max
    pred_ref[...] = jnp.min(
        jnp.where(is_max, cls_ids, jnp.full_like(cls_ids, n_cls)),
        axis=-1, keepdims=True)


def _pick_row_tile(n_rows: int, max_rows: int = 512) -> int:
    """Biggest batch tile that evenly divides n_rows (sublane-aligned)."""
    if n_rows <= max_rows:
        return n_rows                       # single tile == full array: always legal
    for t in (512, 256, 128, 64, 32, 16, 8):
        if t <= max_rows and n_rows % t == 0:
            return t
    return n_rows


def cross_entropy_argmax(logits: jax.Array, targets: jax.Array):
    """Per-sample cross-entropy and argmax over the class axis via Pallas."""
    B, C = logits.shape
    logits = logits.astype(jnp.float32)
    # Clamp ids before they reach the kernel (cheap hardening, no perf cost).
    targets = jnp.clip(targets.astype(jnp.int32), 0, C - 1).reshape(B, 1)

    tile_b = _pick_row_tile(B)
    grid = (B // tile_b,)

    grid_spec = pltpu.PrefetchScalarGridSpec(
        num_scalar_prefetch=0,
        grid=grid,
        in_specs=[
            pl.BlockSpec((tile_b, C), lambda i: (i, 0)),      # logits tile
            pl.BlockSpec((tile_b, 1), lambda i: (i, 0)),      # targets tile
        ],
        out_specs=[
            pl.BlockSpec((tile_b, 1), lambda i: (i, 0)),      # per-sample loss
            pl.BlockSpec((tile_b, 1), lambda i: (i, 0)),      # per-sample argmax
        ],
    )

    loss, pred = pl.pallas_call(
        _ce_argmax_kernel,
        out_shape=(
            jax.ShapeDtypeStruct((B, 1), jnp.float32),
            jax.ShapeDtypeStruct((B, 1), jnp.int32),
        ),
        grid_spec=grid_spec,
        compiler_params=pltpu.CompilerParams(
            dimension_semantics=("parallel",)),               # disjoint output tiles
    )(logits, targets)

    return loss[:, 0], pred[:, 0]


# --------------------------- module equivalents ---------------------------- #
class TwoHeadModel:
    """Deterministic stand-in for the wrapped model (two linear heads)."""
    # TODO(synk): the original `self.model` is an arbitrary injected nn.Module
    # (a DistilBert-based classifier); only the loss-wrapper hot path is the
    # Pallas target, so the model is stubbed with a small two-head linear net.

    def __init__(self, hidden: int, n_target: int, n_task: int, key: jax.Array):
        k1, k2, k3, k4 = jax.random.split(key, 4)
        self.w_target = 0.1 * jax.random.normal(k1, (hidden, n_target), jnp.float32)
        self.b_target = 0.1 * jax.random.normal(k2, (n_target,), jnp.float32)
        self.w_task = 0.1 * jax.random.normal(k3, (hidden, n_task), jnp.float32)
        self.b_task = 0.1 * jax.random.normal(k4, (n_task,), jnp.float32)

    def __call__(self, x):
        return (x @ self.w_target + self.b_target,
                x @ self.w_task + self.b_task)


class MultiTaskLossWrapper:
    """JAX/Pallas equivalent of the PyTorch MultiTaskLossWrapper."""

    def __init__(self, model, num: int = 2):
        self.model = model
        self.num = num

    def __call__(self, inputs, targets):
        return self.forward(inputs, targets)

    def forward(self, inputs, targets):
        outputs = self.model(inputs)
        targets = jnp.asarray(targets, dtype=jnp.int32)       # LongTensor equiv.

        tgt_loss_vec, tgt_pred = cross_entropy_argmax(outputs[0], targets[0])
        task_loss_vec, task_pred = cross_entropy_argmax(outputs[1], targets[1])

        # F.cross_entropy default reduction='mean', then task weighting.
        target_loss = jnp.mean(tgt_loss_vec) * 0.9
        task_loss = jnp.mean(task_loss_vec) * 0.1

        result = {
            'target': tgt_pred.tolist(),
            'task': task_pred.tolist(),
        }
        losses = {
            'target': target_loss,
            'task': task_loss,
            'total': target_loss + task_loss,
        }
        return result, losses


# --------------------------------- main ------------------------------------ #
if __name__ == "__main__":
    B, HIDDEN, N_TARGET, N_TASK = 64, 32, 16, 4

    key = jax.random.PRNGKey(0)
    kx, km, kt1, kt2 = jax.random.split(key, 4)

    x = jax.random.normal(kx, (B, HIDDEN), dtype=jnp.float32)
    model = TwoHeadModel(HIDDEN, N_TARGET, N_TASK, km)
    wrapper = MultiTaskLossWrapper(model)

    # targets mirrors the PyTorch call site: a list of two per-sample id lists.
    targets = [
        jax.random.randint(kt1, (B,), 0, N_TARGET).tolist(),
        jax.random.randint(kt2, (B,), 0, N_TASK).tolist(),
    ]

    result, losses = wrapper(x, targets)
    jax.block_until_ready(losses['total'])

    # ---------------------- plain-JAX reference check ---------------------- #
    outs = model(x)
    t_arr = jnp.asarray(targets, dtype=jnp.int32)

    def ref_ce_mean(lg, tg):
        m = jnp.max(lg, axis=-1, keepdims=True)
        lse = (m + jnp.log(jnp.sum(jnp.exp(lg - m), axis=-1, keepdims=True)))[:, 0]
        picked = jnp.take_along_axis(lg, tg[:, None], axis=-1)[:, 0]
        return jnp.mean(lse - picked)

    ref_target = ref_ce_mean(outs[0], t_arr[0]) * 0.9
    ref_task = ref_ce_mean(outs[1], t_arr[1]) * 0.1

    assert jnp.allclose(losses['target'], ref_target, rtol=1e-5, atol=1e-5)
    assert jnp.allclose(losses['task'], ref_task, rtol=1e-5, atol=1e-5)
    assert jnp.allclose(losses['total'], ref_target + ref_task, rtol=1e-5, atol=1e-5)
    assert result['target'] == jnp.argmax(outs[0], axis=1).tolist()
    assert result['task'] == jnp.argmax(outs[1], axis=1).tolist()

    print("KERNEL_OK")
</pallas_src>

<mosaic_0001>
module attributes {stable_mosaic.version = 11 : i64} {
  func.func @_ce_argmax_kernel(%arg0: i32, %arg1: memref<64x16xf32, #tpu.memory_space<vmem>>, %arg2: memref<64x1xi32, #tpu.memory_space<vmem>>, %arg3: memref<64x1xf32, #tpu.memory_space<vmem>>, %arg4: memref<64x1xi32, #tpu.memory_space<vmem>>) attributes {dimension_semantics = [#tpu.dimension_semantics<parallel>], iteration_bounds = array<i64: 1>, scalar_prefetch = 0 : i64, scratch_operands = 0 : i64, tpu.core_type = #tpu.core_type<tc>, window_params = [{transform_indices = @transform_0, window_bounds = array<i64: 64, 16>}, {transform_indices = @transform_1, window_bounds = array<i64: 64, 1>}, {transform_indices = @transform_2, window_bounds = array<i64: 64, 1>}, {transform_indices = @transform_3, window_bounds = array<i64: 64, 1>}]} {
    %c0 = arith.constant 0 : index
    %c0_0 = arith.constant 0 : index
    %0 = vector.load %arg1[%c0, %c0_0] : memref<64x16xf32, #tpu.memory_space<vmem>>, vector<64x16xf32>
    %c0_1 = arith.constant 0 : index
    %c0_2 = arith.constant 0 : index
    %1 = vector.load %arg2[%c0_1, %c0_2] : memref<64x1xi32, #tpu.memory_space<vmem>>, vector<64x1xi32>
    %2 = tpu.iota {dimensions = array<i32: 1>} : vector<64x16xi32>
    %cst = arith.constant dense<0xFF800000> : vector<64xf32>
    %3 = vector.multi_reduction <maximumf>, %0, %cst [1] : vector<64x16xf32> to vector<64xf32>
    %4 = vector.shape_cast %3 : vector<64xf32> to vector<64x1xf32>
    %5 = vector.broadcast %4 : vector<64x1xf32> to vector<64x16xf32>
    %6 = arith.subf %0, %5 : vector<64x16xf32>
    %7 = math.exp %6 : vector<64x16xf32>
    %cst_3 = arith.constant dense<0.000000e+00> : vector<64xf32>
    %8 = vector.multi_reduction <add>, %7, %cst_3 [1] : vector<64x16xf32> to vector<64xf32>
    %9 = vector.shape_cast %8 : vector<64xf32> to vector<64x1xf32>
    %10 = math.log %9 : vector<64x1xf32>
    %11 = arith.addf %4, %10 : vector<64x1xf32>
    %12 = vector.broadcast %1 : vector<64x1xi32> to vector<64x16xi32>
    %13 = arith.cmpi eq, %2, %12 : vector<64x16xi32>
    %cst_4 = arith.constant 0.000000e+00 : f32
    %14 = vector.broadcast %cst_4 : f32 to vector<64x16xf32>
    %15 = arith.select %13, %0, %14 : vector<64x16xi1>, vector<64x16xf32>
    %cst_5 = arith.constant dense<0.000000e+00> : vector<64xf32>
    %16 = vector.multi_reduction <add>, %15, %cst_5 [1] : vector<64x16xf32> to vector<64xf32>
    %17 = vector.shape_cast %16 : vector<64xf32> to vector<64x1xf32>
    %18 = arith.subf %11, %17 : vector<64x1xf32>
    %c0_6 = arith.constant 0 : index
    %c0_7 = arith.constant 0 : index
    %19 = vector.load %arg3[%c0_6, %c0_7] : memref<64x1xf32, #tpu.memory_space<vmem>>, vector<64x1xf32>
    tpu.vector_store %arg3[%c0_6, %c0_7], %18 {strides = array<i32>} : memref<64x1xf32, #tpu.memory_space<vmem>>, vector<64x1xf32>,
    %20 = vector.broadcast %4 : vector<64x1xf32> to vector<64x16xf32>
    %21 = arith.cmpf oeq, %0, %20 : vector<64x16xf32>
    %c16_i32 = arith.constant 16 : i32
    %22 = vector.broadcast %c16_i32 : i32 to vector<64x16xi32>
    %23 = arith.select %21, %2, %22 : vector<64x16xi1>, vector<64x16xi32>
    %cst_8 = arith.constant dense<2147483647> : vector<64xi32>
    %24 = vector.multi_reduction <minsi>, %23, %cst_8 [1] : vector<64x16xi32> to vector<64xi32>
    %25 = vector.shape_cast %24 : vector<64xi32> to vector<64x1xi32>
    %c0_9 = arith.constant 0 : index
    %c0_10 = arith.constant 0 : index
    %26 = vector.load %arg4[%c0_9, %c0_10] : memref<64x1xi32, #tpu.memory_space<vmem>>, vector<64x1xi32>
    tpu.vector_store %arg4[%c0_9, %c0_10], %25 {strides = array<i32>} : memref<64x1xi32, #tpu.memory_space<vmem>>, vector<64x1xi32>,
    return
  }
  func.func @transform_0(%arg0: i32) -> (i32, i32) {
    %c0_i32 = arith.constant 0 : i32
    %c0_i32_0 = arith.constant 0 : i32
    return %arg0, %c0_i32 : i32, i32
  }
  func.func @transform_1(%arg0: i32) -> (i32, i32) {
    %c0_i32 = arith.constant 0 : i32
    %c0_i32_0 = arith.constant 0 : i32
    return %arg0, %c0_i32 : i32, i32
  }
  func.func @transform_2(%arg0: i32) -> (i32, i32) {
    %c0_i32 = arith.constant 0 : i32
    %c0_i32_0 = arith.constant 0 : i32
    return %arg0, %c0_i32 : i32, i32
  }
  func.func @transform_3(%arg0: i32) -> (i32, i32) {
    %c0_i32 = arith.constant 0 : i32
    %c0_i32_0 = arith.constant 0 : i32
    return %arg0, %c0_i32 : i32, i32
  }
}

</mosaic_0001>

<bundles_post_ra>
// kernel: tpu_custom_call.1
= control target key start
LH: loop header
LB: loop body
LE: loop exit
PB: predicated region body
PF: predicated region fallthrough
CT: control target
= control target key end

     0   :  { %vm31_vm0 = vcmask 130048   ;;  %v396_v16 = vmov 0   ;;  %v29_v17 = vlaneseq  ;;  %s775_s0 = inlined_call_operand.vmem [shape: f32[64,16], index: 0, kind: input, shape index: {}]   ;;  %s776_s1 = inlined_call_operand.vmem [shape: s32[64,1], index: 1, kind: input, shape index: {}]   ;;  %s777_s2 = inlined_call_operand.vmem [shape: f32[64,1], index: 2, kind: output, shape index: {0}]   ;;  %s778_s3 = inlined_call_operand.vmem [shape: s32[64,1], index: 3, kind: output, shape index: {1}]  }
   0x1   :  { %v420_v0 = vld [vmem:[%s775_s0] sm:$0xff]  ;;  %v425_v1 = vld [vmem:[%s775_s0 + $0x10] sm:$0xff]  ;;  %v430_v2 = vld [vmem:[%s775_s0 + $0x8] sm:$0xff]  ;;  %363 = vset.pattern.permute.xlu1 %v396_v16  ;;  %362 = vset.pattern.permute.xlu0 %v396_v16 }
   0x2   :  { %v32_v3 = vsel %vm31_vm0, %v420_v0, -inf  ;;  %v38_v4 = vsel %vm31_vm0, %v425_v1, -inf  ;;  %v439_v5 = vld [vmem:[%s775_s0 + $0x18] sm:$0xff]  ;;  %v35_v6 = vsel %vm31_vm0, %v430_v2, -inf  ;;  %v448_v8 = vld [vmem:[%s775_s0 + $0x20] sm:$0xff]  ;;  %v453_v9 = vld [vmem:[%s775_s0 + $0x28] sm:$0xff] }
   0x3   :  { %33 = vmax.xlane.f32.xlu0 %v32_v3  ;;  %39 = vmax.xlane.f32.xlu1 %v38_v4  ;;  %v41_v7 = vsel %vm31_vm0, %v439_v5, -inf  ;;  %v44_v10 = vsel %vm31_vm0, %v448_v8, -inf  ;;  %v47_v11 = vsel %vm31_vm0, %v453_v9, -inf  ;;  %v462_v12 = vld [vmem:[%s775_s0 + $0x30] sm:$0xff]  ;;  %v467_v13 = vld [vmem:[%s775_s0 + $0x38] sm:$0xff]  ;;  %v473_v18 = vand.u32 127, %v29_v17 }
   0x4   :  { %v50_v14 = vsel %vm31_vm0, %v462_v12, -inf  ;;  %v53_v15 = vsel %vm31_vm0, %v467_v13, -inf  ;;  %v22_v54 = vld [vmem:[%s776_s1 + $0x8] sm:$0xff]  ;;  %v23_v55 = vld [vmem:[%s776_s1 + $0x10] sm:$0xff]  ;;  %v21_v56 = vld [vmem:[%s776_s1] sm:$0xff] }
   0x5   :  { %v24_v57 = vld [vmem:[%s776_s1 + $0x18] sm:$0xff]  ;;  %v25_v58 = vld [vmem:[%s776_s1 + $0x20] sm:$0xff]  ;;  %v26_v59 = vld [vmem:[%s776_s1 + $0x28] sm:$0xff] }
   0x6   :  { %v27_v60 = vld [vmem:[%s776_s1 + $0x30] sm:$0xff] }
   0x7   :  { %36 = vmax.xlane.f32.xlu0 %v35_v6  ;;  %42 = vmax.xlane.f32.xlu1 %v41_v7  ;;  %v28_v6 = vld [vmem:[%s776_s1 + $0x38] sm:$0xff] }
   0xb   :  { %45 = vmax.xlane.f32.xlu0 %v44_v10  ;;  %48 = vmax.xlane.f32.xlu1 %v47_v11 }
   0xf   :  { %51 = vmax.xlane.f32.xlu0 %v50_v14  ;;  %54 = vmax.xlane.f32.xlu1 %v53_v15 }
  0x90   :  { %v475_v19 = vpop.xlane.xlu0 %33  ;;  %v477_v20 = vpop.xlane.xlu1 %39 }
  0x91   :  { %vm209_vm1 = vcmp.eq.f32.partialorder %v420_v0, %v475_v19  ;;  %vm211_vm2 = vcmp.eq.f32.partialorder %v425_v1, %v477_v20 }
  0x92   :  { %v217_v21 = vsel %vm209_vm1, %v473_v18, 16  ;;  %v219_v22 = vsel %vm211_vm2, %v473_v18, 16 }
  0x93   :  { %v486_v23 = vsel %vm31_vm0, %v217_v21, 2147483647  ;;  %v494_v27 = vsel %vm31_vm0, %v219_v22, 2147483647  ;;  %v56_v22 = vsub.f32 %v420_v0, %v475_v19 }
  0x94   :  { %v488_v24 = vpop.xlane.xlu0 %36  ;;  %v490_v25 = vpop.xlane.xlu1 %42  ;;  %v227_v26 = vshra.s32 %v486_v23, 16  ;;  %v257_v29 = vshra.s32 %v494_v27, 16 }
  0x95   :  { %vm210_vm3 = vcmp.eq.f32.partialorder %v430_v2, %v488_v24  ;;  %vm212_vm4 = vcmp.eq.f32.partialorder %v439_v5, %v490_v25  ;;  %v57_v17 = vsub.f32 %v430_v2, %v488_v24 }
  0x96   :  { %v500_v28 = vcvt.s32.f32 %v227_v26  ;;  %v218_v30 = vsel %vm210_vm3, %v473_v18, 16  ;;  %v220_v31 = vsel %vm212_vm4, %v473_v18, 16  ;;  %v510_v34 = vcvt.s32.f32 %v257_v29 }
  0x97   :  { %v513_v35 = vsel %vm31_vm0, %v218_v30, 2147483647  ;;  %v516_v36 = vsel %vm31_vm0, %v220_v31, 2147483647  ;;  %v58_v29 = vsub.f32 %v425_v1, %v477_v20  ;;  %v66_v30 = vmul.f32 1.442695, %v57_v17 }
  0x98   :  { %230 = vmin.xlane.f32.xlu0 %v500_v28  ;;  %v506_v32 = vpop.xlane.xlu0 %45  ;;  %v508_v33 = vpop.xlane.xlu1 %48  ;;  %v242_v37 = vshra.s32 %v513_v35, 16  ;;  %v272_v38 = vshra.s32 %v516_v36, 16 }
  0x99   :  { %vm213_vm5 = vcmp.eq.f32.partialorder %v448_v8, %v506_v32  ;;  %vm214_vm6 = vcmp.eq.f32.partialorder %v453_v9, %v508_v33  ;;  %364 = vpow2.f32 %v66_v30 }
  0x9a   :  { %v221_v39 = vsel %vm213_vm5, %v473_v18, 16  ;;  %v222_v40 = vsel %vm214_vm6, %v473_v18, 16  ;;  %v527_v41 = vcvt.s32.f32 %v242_v37  ;;  %v541_v46 = vcvt.s32.f32 %v272_v38 }
  0x9b   :  { %v532_v43 = vsel %vm31_vm0, %v221_v39, 2147483647  ;;  %v535_v44 = vsel %vm31_vm0, %v222_v40, 2147483647  ;;  %v64_v39 = vmul.f32 1.442695, %v56_v22 }
  0x9c   :  { %260 = vmin.xlane.f32.xlu0 %v510_v34  ;;  %v529_v42 = vpop.xlane.xlu0 %51  ;;  %v287_v45 = vshra.s32 %v532_v43, 16  ;;  %245 = vmin.xlane.f32.xlu1 %v527_v41  ;;  %v302_v47 = vshra.s32 %v535_v44, 16  ;;  %v580_v61 = vpop.xlane.xlu1 %54 }
  0x9d   :  { %vm215_vm7 = vcmp.eq.f32.partialorder %v462_v12, %v529_v42  ;;  %vm216_vm8 = vcmp.eq.f32.partialorder %v467_v13, %v580_v61  ;;  %366 = vpow2.f32 %v64_v39  ;;  %v63_v17 = vsub.f32 %v467_v13, %v580_v61 }
  0x9e   :  { %v223_v48 = vsel %vm215_vm7, %v473_v18, 16  ;;  %v545_v49 = vcvt.s32.f32 %v287_v45  ;;  %v553_v52 = vcvt.s32.f32 %v302_v47  ;;  %v224_v62 = vsel %vm216_vm8, %v473_v18, 16 }
  0x9f   :  { %v548_v50 = vsel %vm31_vm0, %v223_v48, 2147483647  ;;  %v586_v63 = vsel %vm31_vm0, %v224_v62, 2147483647  ;;  %v68_v45 = vmul.f32 1.442695, %v58_v29  ;;  %v59_v47 = vsub.f32 %v439_v5, %v490_v25 }
  0xa0   :  { %v317_v51 = vshra.s32 %v548_v50, 16  ;;  %290 = vmin.xlane.f32.xlu0 %v545_v49  ;;  %275 = vmin.xlane.f32.xlu1 %v541_v46  ;;  %v332_v3 = vshra.s32 %v586_v63, 16 }
  0xa1   :  { %368 = vpow2.f32 %v68_v45 }
  0xa2   :  { %v555_v53 = vcvt.s32.f32 %v317_v51  ;;  %v589_v4 = vcvt.s32.f32 %v332_v3 }
  0xa4   :  { %320 = vmin.xlane.f32.xlu0 %v555_v53  ;;  %305 = vmin.xlane.f32.xlu1 %v553_v52 }
  0xb5   :  { %132 = vperm.xlu1 %363, %v22_v54  }
  0xb9   :  { %135 = vperm.xlu1 %363, %v23_v55  }
  0xba   :  { %129 = vperm.xlu0 %362, %v21_v56   ;;  %v70_v56 = vmul.f32 1.442695, %v59_v47 }
  0xbc   :  { %370 = vpow2.f32 %v70_v56 }
  0xbd   :  { %138 = vperm.xlu1 %363, %v24_v57   ;;  %v61_v57 = vsub.f32 %v453_v9, %v508_v33 }
  0xbf   :  { %v74_v3 = vmul.f32 1.442695, %v61_v57 }
  0xc1   :  { %141 = vperm.xlu1 %363, %v25_v58  }
  0xc5   :  { %144 = vperm.xlu1 %363, %v26_v59  }
  0xc9   :  { %147 = vperm.xlu1 %363, %v27_v60  }
  0xed   :  { %335 = vmin.xlane.f32.xlu1 %v589_v4 }
  0xfe   :  { %150 = vperm.xlu1 %363, %v28_v6  }
 0x125   :  { %v595_v7 = vpop.xlane.xlu0 %230 }
 0x126   :  { %vm232_vm15 = vcmp.eq.f32.partialorder %v500_v28, %v595_v7  ;;  %v271_v28 = vand.u32 65535, %v516_v36 }
 0x129   :  { %v597_v10 = vpop.xlane.xlu0 %260  ;;  %v599_v11 = vpop.xlane.xlu1 %245 }
 0x12a   :  { %vm247_vm1 = vcmp.eq.f32.partialorder %v527_v41, %v599_v11  ;;  %vm262_vm2 = vcmp.eq.f32.partialorder %v510_v34, %v597_v10  ;;  %v301_v34 = vand.u32 65535, %v535_v44 }
 0x12d   :  { %v601_v14 = vpop.xlane.xlu1 %275  ;;  %v603_v15 = vpop.xlane.xlu0 %290 }
 0x12e   :  { %vm277_vm3 = vcmp.eq.f32.partialorder %v541_v46, %v601_v14  ;;  %vm292_vm4 = vcmp.eq.f32.partialorder %v545_v49, %v603_v15 }
 0x131   :  { %v605_v16 = vpop.xlane.xlu1 %305  ;;  %v609_v21 = vpop.xlane.xlu0 %320 }
 0x132   :  { %vm307_vm5 = vcmp.eq.f32.partialorder %v553_v52, %v605_v16  ;;  %vm322_vm6 = vcmp.eq.f32.partialorder %v555_v53, %v609_v21 }
 0x135   :  { %v133_v26 = vpop.permute.xlu1 %132 }
 0x136   :  { %vm153_vm9 = vcmp.eq.s32.totalorder %v473_v18, %v133_v26  ;;  %v365_v26 = vpop.eup %364 }
 0x137   :  { %v161_v31 = vsel %vm153_vm9, %v430_v2, 0.0  ;;  %v60_v2 = vsub.f32 %v448_v8, %v506_v32  ;;  %v367_v30 = vpop.eup %366 }
 0x138   :  { %v171_v37 = vsel %vm31_vm0, %v161_v31, 0.0  ;;  %v78_v31 = vmul.f32 1.442695, %v63_v17  ;;  %v80_v45 = vsel %vm31_vm0, %v367_v30, 0.0  ;;  %v331_v30 = vand.u32 65535, %v586_v63 }
 0x139   :  { %v130_v38 = vpop.permute.xlu0 %129  ;;  %172 = vadd.xlane.f32.xlu1 %v171_v37  ;;  %v136_v40 = vpop.permute.xlu1 %135  ;;  %v72_v58 = vmul.f32 1.442695, %v60_v2 }
 0x13a   :  { %vm152_vm10 = vcmp.eq.s32.totalorder %v473_v18, %v130_v38  ;;  %vm154_vm11 = vcmp.eq.s32.totalorder %v473_v18, %v136_v40  ;;  %v369_v38 = vpop.eup %368  ;;  %v83_v40 = vsel %vm31_vm0, %v365_v26, 0.0  ;;  %v333_v52 = vcvt.s32.f32 %v331_v30 }
 0x13b   :  { %v160_v48 = vsel %vm152_vm10, %v420_v0, 0.0  ;;  %v162_v54 = vsel %vm154_vm11, %v425_v1, 0.0  ;;  %v62_v0 = vsub.f32 %v462_v12, %v529_v42  ;;  %372 = vpow2.f32 %v72_v58 }
 0x13c   :  { %v168_v51 = vsel %vm31_vm0, %v160_v48, 0.0  ;;  %v174_v60 = vsel %vm31_vm0, %v162_v54, 0.0  ;;  %374 = vpow2.f32 %v74_v3  ;;  %v86_v47 = vsel %vm31_vm0, %v369_v38, 0.0 }
 0x13d   :  { %169 = vadd.xlane.f32.xlu0 %v168_v51  ;;  %v139_v55 = vpop.permute.xlu1 %138  ;;  %v76_v6 = vmul.f32 1.442695, %v62_v0 }
 0x13e   :  { %vm155_vm12 = vcmp.eq.s32.totalorder %v473_v18, %v139_v55  ;;  %v226_v55 = vand.u32 65535, %v486_v23 }
 0x13f   :  { %v163_v59 = vsel %vm155_vm12, %v439_v5, 0.0  ;;  %376 = vpow2.f32 %v76_v6  ;;  %v286_v6 = vand.u32 65535, %v532_v43  ;;  %v303_v43 = vcvt.s32.f32 %v301_v34 }
 0x140   :  { %v177_v62 = vsel %vm31_vm0, %v163_v59, 0.0  ;;  %378 = vpow2.f32 %v78_v31  ;;  %v228_v0 = vcvt.s32.f32 %v226_v55  ;;  %v241_v59 = vand.u32 65535, %v513_v35 }
 0x141   :  { %175 = vadd.xlane.f32.xlu0 %v174_v60  ;;  %178 = vadd.xlane.f32.xlu1 %v177_v62  ;;  %v142_v1 = vpop.permute.xlu1 %141  ;;  %v256_v60 = vand.u32 65535, %v494_v27  ;;  %v273_v27 = vcvt.s32.f32 %v271_v28  ;;  %v288_v41 = vcvt.s32.f32 %v286_v6  ;;  %v308_v49 = vsel %vm307_vm5, %v303_v43, inf }
 0x142   :  { %vm156_vm13 = vcmp.eq.s32.totalorder %v473_v18, %v142_v1  ;;  %v233_v1 = vsel %vm232_vm15, %v228_v0, inf  ;;  %v243_v23 = vcvt.s32.f32 %v241_v59  ;;  %v267_v0 = vcvt.f32.s32 %v597_v10 }
 0x143   :  { %v164_v22 = vsel %vm156_vm13, %v448_v8, 0.0  ;;  %v371_v8 = vpop.eup %370  ;;  %v258_v3 = vcvt.s32.f32 %v256_v60  ;;  %v278_v36 = vsel %vm277_vm3, %v273_v27, inf  ;;  %v293_v26 = vsel %vm292_vm4, %v288_v41, inf }
 0x144   :  { %v180_v5 = vsel %vm31_vm0, %v164_v22, 0.0  ;;  %v89_v51 = vsel %vm31_vm0, %v371_v8, 0.0  ;;  %v248_v35 = vsel %vm247_vm1, %v243_v23, inf  ;;  %v316_v22 = vand.u32 65535, %v548_v50 }
 0x145   :  { %v145_v29 = vpop.permute.xlu1 %144  ;;  %181 = vadd.xlane.f32.xlu0 %v180_v5  ;;  %v373_v48 = vpop.eup %372  ;;  %v263_v17 = vsel %vm262_vm2, %v258_v3, inf  ;;  %v252_v60 = vcvt.f32.s32 %v599_v11  ;;  %v268_v10 = vshll.u32 %v267_v0, 16 }
 0x146   :  { %vm157_vm14 = vcmp.eq.s32.totalorder %v473_v18, %v145_v29  ;;  %v375_v2 = vpop.eup %374  ;;  %v318_v46 = vcvt.s32.f32 %v316_v22  ;;  %v282_v22 = vcvt.f32.s32 %v601_v14 }
 0x147   :  { %v165_v37 = vsel %vm157_vm14, %v453_v9, 0.0  ;;  %v92_v9 = vsel %vm31_vm0, %v373_v48, 0.0  ;;  %v95_v56 = vsel %vm31_vm0, %v375_v2, 0.0  ;;  %v253_v34 = vshll.u32 %v252_v60, 16 }
 0x148   :  { %v183_v39 = vsel %vm31_vm0, %v165_v37, 0.0  ;;  %v323_v29 = vsel %vm322_vm6, %v318_v46, inf }
 0x149   :  { %184 = vadd.xlane.f32.xlu1 %v183_v39  ;;  %84 = vadd.xlane.f32.xlu0 %v83_v40  ;;  %v377_v54 = vpop.eup %376  ;;  %v148_v5 = vpop.permute.xlu1 %147 }
 0x14a   :  { %v98_v57 = vsel %vm31_vm0, %v377_v54, 0.0  ;;  %v379_v58 = vpop.eup %378  ;;  %vm158_vm7 = vcmp.eq.s32.totalorder %v473_v18, %v148_v5 }
 0x14b   :  { %v101_v62 = vsel %vm31_vm0, %v379_v58, 0.0  ;;  %v166_v44 = vsel %vm158_vm7, %v462_v12, 0.0 }
 0x14c   :  { %v186_v50 = vsel %vm31_vm0, %v166_v44, 0.0 }
 0x14d   :  { %81 = vadd.xlane.f32.xlu1 %v80_v45  ;;  %87 = vadd.xlane.f32.xlu0 %v86_v47 }
 0x151   :  { %90 = vadd.xlane.f32.xlu1 %v89_v51  ;;  %93 = vadd.xlane.f32.xlu0 %v92_v9 }
 0x155   :  { %96 = vadd.xlane.f32.xlu1 %v95_v56  ;;  %99 = vadd.xlane.f32.xlu0 %v98_v57  ;;  %v237_v56 = vcvt.f32.s32 %v595_v7 }
 0x157   :  { %v238_v28 = vshll.u32 %v237_v56, 16 }
 0x159   :  { %102 = vadd.xlane.f32.xlu1 %v101_v62  ;;  %234 = vmin.xlane.f32.xlu0 %v233_v1 }
 0x15d   :  { %249 = vmin.xlane.f32.xlu1 %v248_v35  ;;  %264 = vmin.xlane.f32.xlu0 %v263_v17  ;;  %v297_v17 = vcvt.f32.s32 %v603_v15 }
 0x161   :  { %279 = vmin.xlane.f32.xlu1 %v278_v36  ;;  %294 = vmin.xlane.f32.xlu0 %v293_v26 }
 0x165   :  { %309 = vmin.xlane.f32.xlu1 %v308_v49  ;;  %324 = vmin.xlane.f32.xlu0 %v323_v29  ;;  %v298_v29 = vshll.u32 %v297_v17, 16 }
 0x169   :  { %187 = vadd.xlane.f32.xlu0 %v186_v50 }
 0x17a   :  { %v676_v31 = vpop.xlane.xlu1 %335 }
 0x17b   :  { %vm337_vm8 = vcmp.eq.f32.partialorder %v589_v4, %v676_v31 }
 0x17c   :  { %v338_v53 = vsel %vm337_vm8, %v333_v52, inf }
 0x17d   :  { %339 = vmin.xlane.f32.xlu1 %v338_v53  ;;  %v283_v53 = vshll.u32 %v282_v22, 16 }
 0x17e   :  { %v151_v37 = vpop.permute.xlu1 %150 }
 0x17f   :  { %vm159_vm9 = vcmp.eq.s32.totalorder %v473_v18, %v151_v37  ;;  %v327_v37 = vcvt.f32.s32 %v609_v21 }
 0x180   :  { %v167_v38 = vsel %vm159_vm9, %v467_v13, 0.0 }
 0x181   :  { %v189_v12 = vsel %vm31_vm0, %v167_v38, 0.0  ;;  %vm200_vm0 = vcmask 7168  }
 0x182   :  { %190 = vadd.xlane.f32.xlu1 %v189_v12 }
 0x1c6   :  { %v173_v8 = vpop.xlane.xlu1 %172 }
 0x1ca   :  { %v170_v39 = vpop.xlane.xlu0 %169 }
 0x1ce   :  { %v176_v40 = vpop.xlane.xlu0 %175  ;;  %v683_v63 = vpop.xlane.xlu1 %178 }
 0x1d2   :  { %v685_v45 = vpop.xlane.xlu0 %181 }
 0x1d6   :  { %v687_v47 = vpop.xlane.xlu1 %184  ;;  %v85_v4 = vpop.xlane.xlu0 %84 }
 0x1d7   :  { %380 = vlog2.f32 %v85_v4 }
 0x1da   :  { %v82_v48 = vpop.xlane.xlu1 %81  ;;  %v88_v2 = vpop.xlane.xlu0 %87 }
 0x1db   :  { %382 = vlog2.f32 %v82_v48 }
 0x1dc   :  { %384 = vlog2.f32 %v88_v2 }
 0x1de   :  { %v91_v18 = vpop.xlane.xlu1 %90  ;;  %v94_v13 = vpop.xlane.xlu0 %93 }
 0x1df   :  { %386 = vlog2.f32 %v91_v18 }
 0x1e0   :  { %388 = vlog2.f32 %v94_v13 }
 0x1e1   :  { %v381_v51 = vpop.eup %380 }
 0x1e2   :  { %v107_v9 = vmul.f32 0.6931472, %v381_v51  ;;  %v97_v54 = vpop.xlane.xlu1 %96  ;;  %v100_v55 = vpop.xlane.xlu0 %99  ;;  %v328_v51 = vshll.u32 %v327_v37, 16 }
 0x1e3   :  { %390 = vlog2.f32 %v97_v54 }
 0x1e4   :  { %v121_v57 = vadd.f32 %v107_v9, %v488_v24  ;;  %392 = vlog2.f32 %v100_v55 }
 0x1e5   :  { %v383_v58 = vpop.eup %382 }
 0x1e6   :  { %v385_v59 = vpop.eup %384  ;;  %v193_v62 = vsub.f32 %v121_v57, %v173_v8  ;;  %v105_v1 = vmul.f32 0.6931472, %v383_v58  ;;  %v693_v23 = vpop.xlane.xlu1 %102  ;;  %v342_v58 = vcvt.f32.s32 %v676_v31 }
 0x1e7   :  { %v235_v3 = vpop.xlane.xlu0 %234  ;;  %v109_v6 = vmul.f32 0.6931472, %v385_v59  ;;  %394 = vlog2.f32 %v693_v23 }
 0x1e8   :  { %v236_v35 = vcvt.f32.s32 %v235_v3  ;;  %202 = vst.msk [vmem:[%s777_s2 + $0x8] sm:$0xff] %vm200_vm0, %v193_v62  ;;  %v120_v24 = vadd.f32 %v105_v1, %v475_v19  ;;  %v343_v60 = vshll.u32 %v342_v58, 16 }
 0x1e9   :  { %v387_v7 = vpop.eup %386  ;;  %v122_v11 = vadd.f32 %v109_v6, %v477_v20 }
 0x1ea   :  { %v239_v27 = vadd.s32 %v238_v28, %v236_v35  ;;  %v389_v41 = vpop.eup %388  ;;  %v192_v5 = vsub.f32 %v120_v24, %v170_v39  ;;  %v111_v36 = vmul.f32 0.6931472, %v387_v7  ;;  %v250_v26 = vpop.xlane.xlu1 %249 }
 0x1eb   :  { %v265_v43 = vpop.xlane.xlu0 %264  ;;  %v194_v46 = vsub.f32 %v122_v11, %v176_v40  ;;  %v113_v49 = vmul.f32 0.6931472, %v389_v41  ;;  %v251_v19 = vcvt.f32.s32 %v250_v26  ;;  %v312_v40 = vcvt.f32.s32 %v605_v16 }
 0x1ec   :  { %345 = vst.msk [vmem:[%s778_s3] sm:$0xff] %vm200_vm0, %v239_v27  ;;  %v266_v15 = vcvt.f32.s32 %v265_v43  ;;  %201 = vst.msk [vmem:[%s777_s2] sm:$0xff] %vm200_vm0, %v192_v5  ;;  %v123_v20 = vadd.f32 %v111_v36, %v490_v25 }
 0x1ed   :  { %v391_v14 = vpop.eup %390  ;;  %203 = vst.msk [vmem:[%s777_s2 + $0x10] sm:$0xff] %vm200_vm0, %v194_v46  ;;  %v124_v44 = vadd.f32 %v113_v49, %v506_v32  ;;  %v254_v50 = vadd.s32 %v253_v34, %v251_v19  ;;  %v313_v13 = vshll.u32 %v312_v40, 16 }
 0x1ee   :  { %v269_v30 = vadd.s32 %v268_v10, %v266_v15  ;;  %v393_v52 = vpop.eup %392  ;;  %v195_v38 = vsub.f32 %v123_v20, %v683_v63  ;;  %v115_v12 = vmul.f32 0.6931472, %v391_v14  ;;  %v280_v39 = vpop.xlane.xlu1 %279 }
 0x1ef   :  { %v295_v25 = vpop.xlane.xlu0 %294  ;;  %v196_v8 = vsub.f32 %v124_v44, %v685_v45  ;;  %346 = vst.msk [vmem:[%s778_s3 + $0x8] sm:$0xff] %vm200_vm0, %v254_v50  ;;  %v281_v32 = vcvt.f32.s32 %v280_v39  ;;  %v117_v63 = vmul.f32 0.6931472, %v393_v52 }
 0x1f0   :  { %347 = vst.msk [vmem:[%s778_s3 + $0x10] sm:$0xff] %vm200_vm0, %v269_v30  ;;  %v296_v21 = vcvt.f32.s32 %v295_v25  ;;  %204 = vst.msk [vmem:[%s777_s2 + $0x18] sm:$0xff] %vm200_vm0, %v195_v38  ;;  %v125_v16 = vadd.f32 %v115_v12, %v508_v33 }
 0x1f1   :  { %205 = vst.msk [vmem:[%s777_s2 + $0x20] sm:$0xff] %vm200_vm0, %v196_v8  ;;  %v284_v45 = vadd.s32 %v283_v53, %v281_v32  ;;  %v126_v55 = vadd.f32 %v117_v63, %v529_v42  ;;  %v395_v42 = vpop.eup %394 }
 0x1f2   :  { %v299_v4 = vadd.s32 %v298_v29, %v296_v21  ;;  %v197_v48 = vsub.f32 %v125_v16, %v687_v47  ;;  %v310_v2 = vpop.xlane.xlu1 %309  ;;  %v119_v0 = vmul.f32 0.6931472, %v395_v42 }
 0x1f3   :  { %v325_v18 = vpop.xlane.xlu0 %324  ;;  %348 = vst.msk [vmem:[%s778_s3 + $0x18] sm:$0xff] %vm200_vm0, %v284_v45  ;;  %v311_v33 = vcvt.f32.s32 %v310_v2 }
 0x1f4   :  { %349 = vst.msk [vmem:[%s778_s3 + $0x20] sm:$0xff] %vm200_vm0, %v299_v4  ;;  %v326_v9 = vcvt.f32.s32 %v325_v18  ;;  %206 = vst.msk [vmem:[%s777_s2 + $0x28] sm:$0xff] %vm200_vm0, %v197_v48  ;;  %v127_v3 = vadd.f32 %v119_v0, %v580_v61 }
 0x1f5   :  { %v314_v47 = vadd.s32 %v313_v13, %v311_v33 }
 0x1f6   :  { %v329_v54 = vadd.s32 %v328_v51, %v326_v9 }
 0x1f7   :  { %v188_v56 = vpop.xlane.xlu0 %187  ;;  %350 = vst.msk [vmem:[%s778_s3 + $0x28] sm:$0xff] %vm200_vm0, %v314_v47 }
 0x1f8   :  { %351 = vst.msk [vmem:[%s778_s3 + $0x30] sm:$0xff] %vm200_vm0, %v329_v54  ;;  %v198_v57 = vsub.f32 %v126_v55, %v188_v56 }
 0x1fa   :  { %207 = vst.msk [vmem:[%s777_s2 + $0x30] sm:$0xff] %vm200_vm0, %v198_v57 }
 0x20a   :  { %v340_v59 = vpop.xlane.xlu1 %339 }
 0x20b   :  { %v341_v62 = vcvt.f32.s32 %v340_v59 }
 0x20d   :  { %v344_v1 = vadd.s32 %v343_v60, %v341_v62 }
 0x20f   :  { %352 = vst.msk [vmem:[%s778_s3 + $0x38] sm:$0xff] %vm200_vm0, %v344_v1  ;;  %v191_v28 = vpop.xlane.xlu1 %190 }
 0x210   :  { %v199_v6 = vsub.f32 %v127_v3, %v191_v28 }
 0x212   :  { %208 = vst.msk [vmem:[%s777_s2 + $0x38] sm:$0xff] %vm200_vm0, %v199_v6 }

</bundles_post_ra>
